<compile_context>
chip_gen: v7x
topology: tpu7x:2x2x1
jax: 0.10.0
libtpu: 0.0.40
codegen_flags: <defaults>
</compile_context>

<pallas_src>
import math

import jax
import jax.numpy as jnp
from jax.experimental import pallas as pl
from jax.experimental.pallas import tpu as pltpu

LANES = 128                       # lane width of the flattened views
PART_ROWS = 8                     # sublane rows of each per-block partial-sum tile
_MAX_BLOCK_BYTES = 4 * 1024 * 1024
_MIN_BLOCK_BYTES = 64 * 1024


# ----------------------------------------------------------- sizing helpers --

def _vmem_capacity_bytes():
    try:
        info = pltpu.get_tpu_info()
        cap = getattr(info, "vmem_capacity_bytes", None)
        if cap:
            return int(cap)
    except Exception:
        pass
    return 64 * 1024 * 1024       # conservative default (v7x per-TensorCore VMEM)


def _budget(n_streams):
    """Per-stream block bytes + scoped-VMEM limit, derived from physical VMEM.

    `n_streams` counts every array moved per grid step (inputs + large outputs).
    The divisor 3 per stream leaves room for double buffering plus in-kernel f32
    temporaries, so the same formula is safe on 64 MiB (v7x) and 128 MiB parts.
    """
    cap = _vmem_capacity_bytes()
    total = min(cap // 3, 40 * 1024 * 1024)
    blk = max(min(total // (3 * n_streams), _MAX_BLOCK_BYTES), _MIN_BLOCK_BYTES)
    limit = min(total + 16 * 1024 * 1024,
                max(cap - 16 * 1024 * 1024, 32 * 1024 * 1024))
    return blk, limit


def _sub_rows(itemsize):
    # dtype-aware sublane granularity: 8 rows f32, 16 bf16, 32 int8/fp8.
    return max(8, 8 * (4 // max(itemsize, 1)))


def _compiler_params(semantics, vmem_limit):
    return pltpu.CompilerParams(dimension_semantics=semantics,
                                vmem_limit_bytes=vmem_limit)


def _flat_view_dims(shape):
    """Pick a free-reshape 2D view (rows, cols); lane-dense whenever possible."""
    n = int(math.prod(shape)) if shape else 1
    if n % LANES == 0:
        cols = LANES
    elif len(shape) >= 1 and shape[-1] > 0:
        # TODO(synk): lane-sparse fallback for element counts not divisible by 128;
        # avoids any HBM pad/copy at the cost of partially filled vector registers.
        cols = int(shape[-1])
    else:
        cols = 1
    return n // cols, cols


def _flat_tile_rows(rows, cols, itemsize, block_bytes):
    sub = _sub_rows(itemsize)
    tile_r = max((block_bytes // (cols * itemsize)) // sub * sub, sub)
    if tile_r >= rows:
        if rows >= 2 * sub:
            # Split into >= 2 blocks so dual-TensorCore parts (v7x) stay balanced.
            tile_r = -(-((rows + 1) // 2) // sub) * sub
            if tile_r >= rows:
                tile_r = rows
        else:
            tile_r = rows
    return tile_r


def _broadcast_structure(pred_shape, w_shape):
    """(outer, rep, inner) if the weight broadcast is one contiguous run of
    replicated axes; () if the weight is a pure reshape of pred; else None."""
    if len(w_shape) > len(pred_shape):
        return None
    ws = (1,) * (len(pred_shape) - len(w_shape)) + tuple(w_shape)
    for p, w in zip(pred_shape, ws):
        if w != 1 and w != p:
            return None
    rep_dims = [i for i, (p, w) in enumerate(zip(pred_shape, ws))
                if w == 1 and p != 1]
    if not rep_dims:
        return ()
    if rep_dims != list(range(rep_dims[0], rep_dims[-1] + 1)):
        return None
    lo, hi = rep_dims[0], rep_dims[-1]
    outer = int(math.prod(pred_shape[:lo]))
    rep = int(math.prod(pred_shape[lo:hi + 1]))
    inner = int(math.prod(pred_shape[hi + 1:]))
    return outer, rep, inner


def _bc_inner_tile(rep, inner, itemsize, n_streams):
    """Inner-axis tile (multiple of 128 or full extent) for the broadcast path."""
    block_bytes, vmem_limit = _budget(n_streams)
    if inner % LANES == 0:
        it = (block_bytes // (rep * itemsize)) // LANES * LANES
        if it < LANES:
            return None
        return min(it, inner), vmem_limit
    if rep * inner * itemsize <= block_bytes:
        return inner, vmem_limit
    return None


def _weighted_mean_denominator(weight, pred_shape):
    # basicsr weight_reduce_loss: /weight.sum() when weight has a real channel
    # dim (>1), else /(weight.sum() * C of the loss).
    wsum = jnp.sum(weight.astype(jnp.float32))
    if weight.ndim >= 2 and weight.shape[1] > 1:
        return wsum
    c = pred_shape[1] if len(pred_shape) >= 2 else 1
    return wsum * jnp.float32(c)


# ---------------------------------------------------------------- kernels ----

def _make_flat_reduce_kernel(tile_r, rows, need_mask, weighted):
    """Per-block (8, cols) partial sums of |p-t| (optionally *w), plus sum(w)."""

    def kernel(*refs):
        if weighted:
            p_ref, t_ref, w_ref, dpart_ref, wpart_ref = refs
        else:
            p_ref, t_ref, dpart_ref = refs

        d = jnp.abs(p_ref[...].astype(jnp.float32) - t_ref[...].astype(jnp.float32))
        if weighted:
            w = w_ref[...].astype(jnp.float32)

        if need_mask:
            # Ragged last block: zero garbage rows (cheap (tile_r, 1) sublane iota).
            row = jax.lax.broadcasted_iota(jnp.int32, (tile_r, 1), 0)
            valid = (pl.program_id(0) * tile_r + row) < rows
            d = jnp.where(valid, d, 0.0)
            if weighted:
                w = jnp.where(valid, w, 0.0)

        first = jax.lax.broadcasted_iota(jnp.int32, (PART_ROWS, 1), 0) == 0
        if weighted:
            dpart_ref[...] = jnp.where(first, jnp.sum(d * w, axis=0, keepdims=True), 0.0)
            wpart_ref[...] = jnp.where(first, jnp.sum(w, axis=0, keepdims=True), 0.0)
        else:
            dpart_ref[...] = jnp.where(first, jnp.sum(d, axis=0, keepdims=True), 0.0)

    return kernel


def _make_flat_none_kernel(weighted, lw):
    def kernel(*refs):
        if weighted:
            p_ref, t_ref, w_ref, o_ref = refs
            r = jnp.abs(p_ref[...] - t_ref[...]) * w_ref[...]
        else:
            p_ref, t_ref, o_ref = refs
            r = jnp.abs(p_ref[...] - t_ref[...])
        if lw != 1.0:
            r = r * lw
        o_ref[...] = r.astype(o_ref.dtype)

    return kernel


def _bc_reduce_kernel(p_ref, t_ref, dpart_ref):
    # |p - t| reduced over the replicated ("rep") axis -> weight-shaped partials.
    d = jnp.abs(p_ref[...].astype(jnp.float32) - t_ref[...].astype(jnp.float32))
    dpart_ref[...] = jnp.sum(d, axis=1, keepdims=True)


def _make_bc_none_kernel(lw):
    def kernel(p_ref, t_ref, w_ref, o_ref):
        r = jnp.abs(p_ref[...] - t_ref[...]) * w_ref[...]   # w broadcasts over rep
        if lw != 1.0:
            r = r * lw
        o_ref[...] = r.astype(o_ref.dtype)

    return kernel


# ---------------------------------------------------------------- plumbing ---

def _flat_reduce(p2d, t2d, w2d, rows, cols):
    itemsize = p2d.dtype.itemsize
    weighted = w2d is not None
    block_bytes, vmem_limit = _budget(3 if weighted else 2)
    tile_r = _flat_tile_rows(rows, cols, itemsize, block_bytes)
    num_blocks = pl.cdiv(rows, tile_r)
    need_mask = (rows % tile_r) != 0

    in_spec = pl.BlockSpec((tile_r, cols), lambda i: (i, 0))
    part_spec = pl.BlockSpec((PART_ROWS, cols), lambda i: (i, 0))
    part_shape = jax.ShapeDtypeStruct((num_blocks * PART_ROWS, cols), jnp.float32)
    kernel = _make_flat_reduce_kernel(tile_r, rows, need_mask, weighted)
    params = _compiler_params(("parallel",), vmem_limit)

    if weighted:
        dpart, wpart = pl.pallas_call(
            kernel,
            out_shape=(part_shape, part_shape),
            grid=(num_blocks,),
            in_specs=[in_spec, in_spec, in_spec],
            out_specs=(part_spec, part_spec),
            compiler_params=params,
        )(p2d, t2d, w2d)
        return jnp.sum(dpart), jnp.sum(wpart)

    dpart = pl.pallas_call(
        kernel,
        out_shape=part_shape,
        grid=(num_blocks,),
        in_specs=[in_spec, in_spec],
        out_specs=part_spec,
        compiler_params=params,
    )(p2d, t2d)
    return jnp.sum(dpart), None


def _flat_none(p2d, t2d, w2d, rows, cols, out_dtype, lw):
    itemsize = p2d.dtype.itemsize
    weighted = w2d is not None
    block_bytes, vmem_limit = _budget(4 if weighted else 3)
    tile_r = _flat_tile_rows(rows, cols, itemsize, block_bytes)
    num_blocks = pl.cdiv(rows, tile_r)
    spec = pl.BlockSpec((tile_r, cols), lambda i: (i, 0))
    args = (p2d, t2d, w2d) if weighted else (p2d, t2d)
    return pl.pallas_call(
        _make_flat_none_kernel(weighted, lw),
        out_shape=jax.ShapeDtypeStruct((rows, cols), out_dtype),
        grid=(num_blocks,),
        in_specs=[spec] * len(args),
        out_specs=spec,
        compiler_params=_compiler_params(("parallel",), vmem_limit),
    )(*args)


def _bc_reduce(p3, t3, outer, rep, inner, inner_tile, vmem_limit):
    n_j = pl.cdiv(inner, inner_tile)
    in_spec = pl.BlockSpec((1, rep, inner_tile), lambda o, j: (o, 0, j))
    out_spec = pl.BlockSpec((1, 1, inner_tile), lambda o, j: (o, 0, j))
    return pl.pallas_call(
        _bc_reduce_kernel,
        out_shape=jax.ShapeDtypeStruct((outer, 1, inner), jnp.float32),
        grid=(outer, n_j),
        in_specs=[in_spec, in_spec],
        out_specs=out_spec,
        compiler_params=_compiler_params(("parallel", "parallel"), vmem_limit),
    )(p3, t3)


def _bc_none(p3, t3, w3, outer, rep, inner, inner_tile, vmem_limit, lw, out_dtype):
    n_j = pl.cdiv(inner, inner_tile)
    io_spec = pl.BlockSpec((1, rep, inner_tile), lambda o, j: (o, 0, j))
    w_spec = pl.BlockSpec((1, 1, inner_tile), lambda o, j: (o, 0, j))
    return pl.pallas_call(
        _make_bc_none_kernel(lw),
        out_shape=jax.ShapeDtypeStruct((outer, rep, inner), out_dtype),
        grid=(outer, n_j),
        in_specs=[io_spec, io_spec, w_spec],
        out_specs=io_spec,
        compiler_params=_compiler_params(("parallel", "parallel"), vmem_limit),
    )(p3, t3, w3)


# --------------------------------------------------------------- public API --

def l1_loss_pallas(pred, target, weight=None, *, loss_weight=1.0, reduction="mean"):
    """JAX/Pallas equivalent of neosr L1Loss.forward(pred, target, weight)."""
    if reduction not in ("none", "mean", "sum"):
        raise ValueError(f"Unsupported reduction mode: {reduction}. "
                         f"Supported ones are: ['none', 'mean', 'sum']")
    pred = jnp.asarray(pred)
    target = jnp.asarray(target)
    if target.shape != pred.shape:
        raise ValueError("pred and target must have the same shape")

    static_lw = float(loss_weight) if isinstance(loss_weight, (int, float)) else None
    kernel_lw = static_lw if static_lw is not None else 1.0

    n = int(pred.size)
    if n == 0:
        if reduction == "none":
            return jnp.zeros(pred.shape, pred.dtype)
        val = jnp.float32(0.0) if reduction == "sum" else jnp.float32(float("nan"))
        return (val * loss_weight).astype(pred.dtype)

    # ---- classify the weight --------------------------------------------
    w_mode = "unweighted"
    bc_dims = None
    if weight is not None:
        weight = jnp.asarray(weight)
        if weight.shape == pred.shape:
            w_mode = "full"
        else:
            struct = _broadcast_structure(pred.shape, weight.shape)
            if struct == ():
                weight = weight.reshape(pred.shape)
                w_mode = "full"
            elif struct is not None and struct[2] >= LANES:
                w_mode = "bc"
                bc_dims = struct
            else:
                w_mode = "fallback"

    itemsize = pred.dtype.itemsize

    # ---- reduction == 'none' ---------------------------------------------
    if reduction == "none":
        plan = None
        if w_mode == "bc":
            outer, rep, inner = bc_dims
            plan = _bc_inner_tile(rep, inner, itemsize, 4)
            if plan is None:
                w_mode = "fallback"
        if w_mode == "fallback":
            # TODO(synk): unusual broadcast patterns materialize the broadcast
            # weight in HBM before the kernel (extra full-size copy).
            weight = jnp.broadcast_to(weight, pred.shape)
            w_mode = "full"
        if w_mode == "bc":
            inner_tile, vmem_limit = plan
            out = _bc_none(pred.reshape(outer, rep, inner),
                           target.reshape(outer, rep, inner),
                           weight.reshape(outer, 1, inner),
                           outer, rep, inner, inner_tile, vmem_limit,
                           kernel_lw, pred.dtype).reshape(pred.shape)
        else:
            rows, cols = _flat_view_dims(pred.shape)
            p2d = pred.reshape(rows, cols)
            t2d = target.reshape(rows, cols)
            w2d = weight.reshape(rows, cols) if w_mode == "full" else None
            out = _flat_none(p2d, t2d, w2d, rows, cols, pred.dtype,
                             kernel_lw).reshape(pred.shape)
        if static_lw is None:
            out = (out * loss_weight).astype(pred.dtype)
        return out

    # ---- reduction in {'mean', 'sum'} -------------------------------------
    wsum_fused = None
    plan = None
    if w_mode == "bc":
        outer, rep, inner = bc_dims
        plan = _bc_inner_tile(rep, inner, itemsize, 3)
        if plan is None:
            w_mode = "fallback"
    if w_mode == "fallback":
        # TODO(synk): unusual broadcast patterns materialize the broadcast weight.
        weight_big = jnp.broadcast_to(weight, pred.shape)

    if w_mode == "bc":
        inner_tile, vmem_limit = plan
        d_sums = _bc_reduce(pred.reshape(outer, rep, inner),
                            target.reshape(outer, rep, inner),
                            outer, rep, inner, inner_tile, vmem_limit)
        w3 = weight.reshape(outer, 1, inner).astype(jnp.float32)
        total = jnp.sum(d_sums * w3)          # tiny (weight-sized) XLA fusion
    else:
        rows, cols = _flat_view_dims(pred.shape)
        p2d = pred.reshape(rows, cols)
        t2d = target.reshape(rows, cols)
        if w_mode == "unweighted":
            w2d = None
        elif w_mode == "full":
            w2d = weight.reshape(rows, cols)
        else:  # fallback
            w2d = weight_big.reshape(rows, cols)
        total, wsum_fused = _flat_reduce(p2d, t2d, w2d, rows, cols)

    if reduction == "sum":
        result = total
    else:  # mean
        if weight is None:
            denom = jnp.float32(n)
        elif w_mode == "full":
            denom = wsum_fused            # == sum(weight), fused in the same pass
        else:
            denom = _weighted_mean_denominator(weight, pred.shape)
        result = total / denom

    return (result * loss_weight).astype(pred.dtype)


class L1Loss:
    """Mirror of the PyTorch module (loss_weight=1.0, reduction='mean')."""

    def __init__(self, loss_weight=1.0, reduction="mean"):
        if reduction not in ("none", "mean", "sum"):
            raise ValueError(f"Unsupported reduction mode: {reduction}. "
                             f"Supported ones are: ['none', 'mean', 'sum']")
        self.loss_weight = loss_weight
        self.reduction = reduction

    def __call__(self, pred, target, weight=None, **kwargs):
        return l1_loss_pallas(pred, target, weight,
                              loss_weight=self.loss_weight,
                              reduction=self.reduction)


if __name__ == "__main__":
    key = jax.random.PRNGKey(0)
    k1, k2, k3, k4, k5, k6 = jax.random.split(key, 6)
    # PyTorch-style NCHW inputs
    pred = jax.random.normal(k1, (2, 4, 16, 16), dtype=jnp.float32)
    target = jax.random.normal(k2, (2, 4, 16, 16), dtype=jnp.float32)
    weight_full = jax.random.uniform(k3, (2, 4, 16, 16), dtype=jnp.float32)
    weight_bc = jax.random.uniform(k4, (2, 1, 16, 16), dtype=jnp.float32)

    # mean (default)
    loss = jax.block_until_ready(L1Loss()(pred, target))
    ref = jnp.mean(jnp.abs(pred - target))
    assert jnp.allclose(loss, ref, rtol=1e-5, atol=1e-6), (loss, ref)

    # sum
    loss_sum = jax.block_until_ready(L1Loss(reduction="sum")(pred, target))
    assert jnp.allclose(loss_sum, jnp.sum(jnp.abs(pred - target)), rtol=1e-5)

    # none
    loss_none = jax.block_until_ready(L1Loss(reduction="none")(pred, target))
    assert loss_none.shape == pred.shape
    assert jnp.allclose(loss_none, jnp.abs(pred - target), rtol=1e-5)

    # loss_weight scaling
    loss_lw = jax.block_until_ready(L1Loss(loss_weight=0.5)(pred, target))
    assert jnp.allclose(loss_lw, 0.5 * ref, rtol=1e-5)

    # weighted mean, full-shape weight: sum(w*|d|) / sum(w)
    lw_full = jax.block_until_ready(L1Loss()(pred, target, weight_full))
    ref_w = jnp.sum(weight_full * jnp.abs(pred - target)) / jnp.sum(weight_full)
    assert jnp.allclose(lw_full, ref_w, rtol=1e-5), (lw_full, ref_w)

    # weighted mean, broadcastable (N,1,H,W): basicsr divides by w.sum()*C
    lw_bc = jax.block_until_ready(L1Loss()(pred, target, weight_bc))
    ref_wb = (jnp.sum(weight_bc * jnp.abs(pred - target))
              / (jnp.sum(weight_bc) * pred.shape[1]))
    assert jnp.allclose(lw_bc, ref_wb, rtol=1e-5), (lw_bc, ref_wb)

    # weighted 'none', broadcastable weight (in-kernel broadcast, no HBM copy)
    ln_bc = jax.block_until_ready(L1Loss(reduction="none")(pred, target, weight_bc))
    assert jnp.allclose(ln_bc, jnp.abs(pred - target) * weight_bc, rtol=1e-5)

    # non-128-multiple element count (lane-sparse view + ragged-row mask path)
    pu = jax.random.normal(k5, (2, 3, 5, 7), dtype=jnp.float32)
    tu = jax.random.normal(k6, (2, 3, 5, 7), dtype=jnp.float32)
    lu = jax.block_until_ready(L1Loss()(pu, tu))
    assert jnp.allclose(lu, jnp.mean(jnp.abs(pu - tu)), rtol=1e-5), lu
    lun = jax.block_until_ready(L1Loss(reduction="none")(pu, tu))
    assert jnp.allclose(lun, jnp.abs(pu - tu), rtol=1e-5)

    # bf16 inputs (f32 accumulation, result cast back to bf16)
    pb = pred.astype(jnp.bfloat16)
    tb = target.astype(jnp.bfloat16)
    lb = jax.block_until_ready(L1Loss()(pb, tb))
    ref_b = jnp.mean(jnp.abs(pb.astype(jnp.float32) - tb.astype(jnp.float32)))
    assert abs(float(lb) - float(ref_b)) < 2e-2, (lb, ref_b)

    print("KERNEL_OK")
</pallas_src>

<mosaic_0001>
module attributes {stable_mosaic.version = 11 : i64} {
  func.func @kernel(%arg0: i32, %arg1: memref<8x128xf32, #tpu.memory_space<vmem>>, %arg2: memref<8x128xf32, #tpu.memory_space<vmem>>, %arg3: memref<8x128xf32, #tpu.memory_space<vmem>>) attributes {dimension_semantics = [#tpu.dimension_semantics<parallel>], iteration_bounds = array<i64: 2>, scalar_prefetch = 0 : i64, scratch_operands = 0 : i64, tpu.core_type = #tpu.core_type<tc>, window_params = [{transform_indices = @transform_0, window_bounds = array<i64: 8, 128>}, {transform_indices = @transform_1, window_bounds = array<i64: 8, 128>}, {transform_indices = @transform_2, window_bounds = array<i64: 8, 128>}]} {
    %c0 = arith.constant 0 : index
    %c0_0 = arith.constant 0 : index
    %0 = vector.load %arg1[%c0, %c0_0] : memref<8x128xf32, #tpu.memory_space<vmem>>, vector<8x128xf32>
    %c0_1 = arith.constant 0 : index
    %c0_2 = arith.constant 0 : index
    %1 = vector.load %arg2[%c0_1, %c0_2] : memref<8x128xf32, #tpu.memory_space<vmem>>, vector<8x128xf32>
    %2 = arith.subf %0, %1 : vector<8x128xf32>
    %3 = math.absf %2 : vector<8x128xf32>
    %4 = tpu.iota {dimensions = array<i32: 0>} : vector<8x1xi32>
    %c0_i32 = arith.constant 0 : i32
    %5 = vector.broadcast %c0_i32 : i32 to vector<8x1xi32>
    %6 = arith.cmpi eq, %4, %5 : vector<8x1xi32>
    %cst = arith.constant dense<0.000000e+00> : vector<128xf32>
    %7 = vector.multi_reduction <add>, %3, %cst [0] : vector<8x128xf32> to vector<128xf32>
    %8 = vector.shape_cast %7 : vector<128xf32> to vector<1x128xf32>
    %cst_3 = arith.constant 0.000000e+00 : f32
    %9 = vector.shape_cast %6 : vector<8x1xi1> to vector<8x1xi1>
    %10 = vector.broadcast %9 : vector<8x1xi1> to vector<8x128xi1>
    %11 = vector.shape_cast %8 : vector<1x128xf32> to vector<1x128xf32>
    %12 = vector.broadcast %11 : vector<1x128xf32> to vector<8x128xf32>
    %13 = vector.broadcast %cst_3 : f32 to vector<8x128xf32>
    %14 = arith.select %10, %12, %13 : vector<8x128xi1>, vector<8x128xf32>
    %c0_4 = arith.constant 0 : index
    %c0_5 = arith.constant 0 : index
    %15 = vector.load %arg3[%c0_4, %c0_5] : memref<8x128xf32, #tpu.memory_space<vmem>>, vector<8x128xf32>
    tpu.vector_store %arg3[%c0_4, %c0_5], %14 {strides = array<i32>} : memref<8x128xf32, #tpu.memory_space<vmem>>, vector<8x128xf32>,
    return
  }
  func.func @transform_0(%arg0: i32) -> (i32, i32) {
    %c0_i32 = arith.constant 0 : i32
    %c0_i32_0 = arith.constant 0 : i32
    return %arg0, %c0_i32 : i32, i32
  }
  func.func @transform_1(%arg0: i32) -> (i32, i32) {
    %c0_i32 = arith.constant 0 : i32
    %c0_i32_0 = arith.constant 0 : i32
    return %arg0, %c0_i32 : i32, i32
  }
  func.func @transform_2(%arg0: i32) -> (i32, i32) {
    %c0_i32 = arith.constant 0 : i32
    %c0_i32_0 = arith.constant 0 : i32
    return %arg0, %c0_i32 : i32, i32
  }
}

</mosaic_0001>

<bundles_post_ra>
// kernel: tpu_custom_call.1
= control target key start
LH: loop header
LB: loop body
LE: loop exit
PB: predicated region body
PF: predicated region fallthrough
CT: control target
= control target key end

     0   :  { %7 = vsyncpa [#allocation3], 0  ;;  %s745_s0 = inlined_call_operand.hbm [shape: f32[16,128], index: 0, kind: input, shape index: {}]   ;;  %s746_s1 = inlined_call_operand.hbm [shape: f32[16,128], index: 1, kind: input, shape index: {}]   ;;  %s747_s2 = inlined_call_operand.hbm [shape: f32[16,128], index: 2, kind: output, shape index: {}]  }
   0x1   :  { %9 = vsyncpa [#allocation3 + $0x1], 0 }
   0x2   :  { %10 = vsyncpa [#allocation6], 0 }
   0x3   :  { %12 = vsyncpa [#allocation6 + $0x1], 0 }
   0x4   :  { %13 = vsyncpa [#allocation4], 0 }
   0x5   :  { %15 = vsyncpa [#allocation4 + $0x1], 0  ;;  %s536_s9 = smov 0   ;;  %s538_s10 = smov 0  }
   0x6   :  { %s540_s11 = smov 0   ;;  %s542_s12 = smov 0  }
   0x7 LB: > { %s557_s13 = sadd.s32 4294967295, %s516_s12   ;;  %s320_s14 = sadd.s32 4294967294, %s516_s12   ;;  %s516_s12 = sphi %s542_s12, %s766_s12   ;;  %s512_s11 = sphi %s540_s11, %s765_s11   ;;  %s508_s10 = sphi %s538_s10, %s764_s10   ;;  %s504_s9 = sphi %s536_s9, %s763_s9  }
   0x8   : > { %s561_s15 = sadd.s32 1, %s516_s12   ;;  %s28_s16 = sadd.s32 1, %s512_s11 }
   0x9   : > { %s25_s17 = ssub.s32 %s516_s12, %s561_s15  ;;  %p35_p0 = scmp.ne.s32.totalorder %s512_s11, %s508_s10 }
   0xa   : > { %p26_p1 = scmp.eq.s32.totalorder %s25_s17, 0  ;;  %p36_p2 = scmp.eq.s32.totalorder %s516_s12, 0 }
   0xb   : > { %p41_p3 = scmp.ne.s32.totalorder %s508_s10, %s504_s9  ;;  %p42_p4 = scmp.eq.s32.totalorder %s557_s13, 0 }
   0xc   : > { %s573_s18 = scalar_select %p26_p1, %s512_s11, %s28_s16  }
   0xd   : > { %p575_p5 = por %p36_p2, %p35_p0  ;;  %p579_p6 = por %p42_p4, %p41_p3 }
   0xe   : > { %p91_p7 = scmp.eq.s32.totalorder %s557_s13, 1  ;;  %p97_p8 = scmp.eq.s32.totalorder %s320_s14, 1 }
   0xf   : > { %s751_s20 = scalar_select %p579_p6, 1, 0 }
  0x10   : > { %p352_p10 = scmp.lt.s32.totalorder %s516_s12, 2  ;;  %p586_p11 = por %p91_p7, %p35_p0 }
  0x11   : > { %p590_p12 = por %p97_p8, %p41_p3  ;;  %s595_s23 = sand.u32 1, %s512_s11  }
  0x12   : > { %s752_s21 = scalar_select %p586_p11, 1, 0 }
  0x13   : > { %s753_s22 = scalar_select %p590_p12, 1, 0 }
  0x14   : > { %s324_s24 = sshll.u32 %s516_s12, 7  ;;  %s323_s25 = sshll.u32 %s595_s23, 3 }
  0x15   : > { %s604_s28 = scalar_lea.hbm %s745_s0, %s324_s24  ;;  %s121_s29 = scalar_lea.vmem [#allocation2], %s323_s25 }
  0x16   : > { %s128_s30 = sshll.u32 %s121_s29, 4  ;;  %p610_p13 = pnand %p352_p10, %p575_p5  ;;  %s614_s30 = int_to_ptr.vmem [resolvable:$true] %s128_s30 }
  0x17   : > { %s118_s4 = scalar_lea.sflag [#allocation3], %s595_s23  ;;  %s386_s5 = scalar_lea.hbm %s604_s28, 128 }
  0x18   : > { %p387_p2 = scmp.ne.s32.totalorder %s604_s28, %s386_s5  ;;  %p388_p3 = pneg %p610_p13 }
  0x19   : > { %s391_s8 = scalar_lea.hbm %s745_s0, 256  ;;  %p392_p5 = scmp.lt.u32.totalorder %s604_s28, %s745_s0 }
  0x1a   : > { %p389_p4 = pnand %p388_p3, %p387_p2  ;;  %p393_p8 = scmp.lt.u32.totalorder %s391_s8, %s386_s5 }
  0x1b   : > { %p395_p9 = scmp.lt.u32.totalorder %s386_s5, %s604_s28 }
  0x1c   : > { %p390_p7 = pneg %p389_p4  ;;  %p394_p10 = por %p393_p8, %p392_p5 }
  0x1e   : > { %p396_p0 = por %p395_p9, %p394_p10 }
  0x20   : > { %p397_p1 = pnand %p396_p0, %p390_p7 }
  0x22   : > { %400 = shalt.err (!%p397_p1)
}
  0x23   : > { %s401_s17 = scalar_lea.vmem %s614_s30, 128  ;;  %s518_s19 = smov [#allocation2]  }
  0x24   : > { %p402_p2 = scmp.ne.s32.totalorder %s614_s30, %s401_s17  ;;  %s406_s26 = sshll.u32 %s518_s19, 4  ;;  %s407_s26 = int_to_ptr.vmem [resolvable:$false] %s406_s26 }
  0x25   : > { %s408_s27 = scalar_lea.vmem %s407_s26, 256  ;;  %p409_p11 = scmp.lt.s32.totalorder %s614_s30, %s407_s26 }
  0x26   : > { %p404_p4 = pnand %p402_p2, %p388_p3  ;;  %p410_p5 = scmp.lt.s32.totalorder %s408_s27, %s401_s17 }
  0x28   : > { %p405_p12 = pneg %p404_p4  ;;  %p411_p8 = por %p410_p5, %p409_p11 }
  0x2a   : > { %p412_p9 = pnand %p411_p8, %p405_p12 }
  0x2c   : > { %415 = shalt.err (!%p412_p9)
}
  0x2d   : > { %344 = dma.hbm_to_vmem [thread:$0]  (!%p610_p13), %s604_s28, 128, %s614_s30, %s118_s4  }
  0x2e   : > { %p755_p0 = scmp.lt.s32.totalorder %s516_s12, 3  ;;  %p756_p1 = scmp.ge.s32.totalorder %s516_s12, 1 }
  0x2f   : > { %s657_s7 = scalar_lea.hbm %s746_s1, %s324_s24  ;;  %s139_s8 = scalar_lea.vmem [#allocation5], %s323_s25 }
  0x30   : > { %p648_p7 = pnand %p756_p1, %p755_p0  ;;  %s146_s14 = sshll.u32 %s139_s8, 4  ;;  %s147_s14 = int_to_ptr.vmem [resolvable:$true] %s146_s14 }
  0x31   : > { %s136_s28 = scalar_lea.sflag [#allocation6], %s595_s23  ;;  %s416_s30 = scalar_lea.hbm %s657_s7, 128 }
  0x32   : > { %s757_s29 = scalar_select %p648_p7, 1, 0 }
  0x33   : > { %p417_p11 = scmp.ne.s32.totalorder %s657_s7, %s416_s30  ;;  %s421_s24 = scalar_lea.hbm %s746_s1, 256 }
  0x34   : > { %p422_p2 = scmp.lt.u32.totalorder %s657_s7, %s746_s1  ;;  %p423_p4 = scmp.lt.u32.totalorder %s421_s24, %s416_s30 }
  0x35   : > { %p419_p12 = pnand %p417_p11, %p388_p3  ;;  %p425_p8 = scmp.lt.u32.totalorder %s416_s30, %s657_s7 }
  0x36   : > { %p424_p5 = por %p423_p4, %p422_p2 }
  0x37   : > { %p420_p10 = pneg %p419_p12 }
  0x38   : > { %p426_p9 = por %p425_p8, %p424_p5 }
  0x3a   : > { %p427_p0 = pnand %p426_p9, %p420_p10 }
  0x3c   : > { %430 = shalt.err (!%p427_p0)
}
  0x3d   : > { %s431_s23 = scalar_lea.vmem %s147_s14, 128  ;;  %s519_s25 = smov [#allocation5]  }
  0x3e   : > { %p432_p1 = scmp.ne.s32.totalorder %s147_s14, %s431_s23  ;;  %s436_s26 = sshll.u32 %s519_s25, 4  ;;  %s437_s26 = int_to_ptr.vmem [resolvable:$false] %s436_s26 }
  0x3f   : > { %s438_s27 = scalar_lea.vmem %s437_s26, 256  ;;  %p439_p6 = scmp.lt.s32.totalorder %s147_s14, %s437_s26 }
  0x40   : > { %p434_p11 = pnand %p432_p1, %p388_p3  ;;  %p440_p7 = scmp.lt.s32.totalorder %s438_s27, %s431_s23 }
  0x42   : > { %p435_p12 = pneg %p434_p11  ;;  %p441_p2 = por %p440_p7, %p439_p6 }
  0x44   : > { %p442_p4 = pnand %p441_p2, %p435_p12 }
  0x46   : > { %445 = shalt.err (!%p442_p4)
}
  0x47   : > { %347 = dma.hbm_to_vmem [thread:$0]  (!%p610_p13), %s657_s7, 128, %s147_s14, %s136_s28  }
  0x48   : > { %p758_p10 = scmp.ne.s32.totalorder %s757_s29, 0 }
  0x49   : > { %s684_s5 = sand.u32 (!%p758_p10), 1, %s508_s10   ;;  %p759_p3 = scmp.ne.s32.totalorder (!%p758_p10), %s751_s20, 0 }
  0x4a   : > { %155 = sbr.rel (%p758_p10) target bundleno = 116 (0x74), region = 28  ;;  %s328_s6 = sshll.u32 (!%p758_p10), %s684_s5, 3 }
  0x4b   : > { %s158_s8 = scalar_lea.sflag (!%p758_p10), [#allocation3], %s684_s5  ;;  %s161_s30 = scalar_lea.vmem (!%p758_p10), [#allocation2], %s328_s6 }
  0x51   : > { %491 = dma.done.wait (%p759_p3), %s158_s8, 128  }
  0x52   : > { %493 = vsyncadd (%p759_p3), %s158_s8, 4294967168  ;;  %s167_s3 = scalar_lea.sflag [#allocation6], %s684_s5  ;;  %s170_s7 = scalar_lea.vmem [#allocation5], %s328_s6 }
  0x53   : > { %495 = dma.done.wait (%p759_p3), %s167_s3, 128  }
  0x54   : > { %497 = vsyncadd (%p759_p3), %s167_s3, 4294967168  ;;  %v196_v0 = vld [vmem:[%s161_s30] sm:$0xff]  ;;  %v197_v1 = vld [vmem:[%s170_s7] sm:$0xff]  ;;  %v200_v5 = vlaneseq  ;;  %s195_s29 = scalar_lea.vmem [#allocation7], %s328_s6  ;;  %s332_s28 = sshll.u32 %s557_s13, 7 }
  0x55   : > { %v198_v2 = vsub.f32 %v196_v0, %v197_v1  ;;  %s227_s14 = sshll.u32 %s195_s29, 4  ;;  %s703_s16 = scalar_lea.hbm %s747_s2, %s332_s28  ;;  %s698_s14 = int_to_ptr.vmem [resolvable:$true] %s227_s14 }
  0x56   : > { %v201_v8 = vshrl.u32 %v200_v5, 7  ;;  %s214_s24 = scalar_lea.sflag [#allocation4], %s684_s5  ;;  %s446_s17 = scalar_lea.vmem %s698_s14, 128 }
  0x57   : > { %v199_v3 = vand.u32 2147483647, %v198_v2  ;;  %p447_p6 = scmp.ne.s32.totalorder %s698_s14, %s446_s17  ;;  %p760_p13 = scmp.ne.s32.totalorder %s752_s21, 0 }
  0x58   : > { %vm202_vm0 = vcmp.eq.s32.totalorder %v201_v8, 0  ;;  %s520_s13 = smov [#allocation7]  }
  0x59   : > { %v203_v4 = vrot.slane %v199_v3, 4  ;;  %p448_p7 = pnand %p447_p6, %p760_p13  ;;  %s450_s19 = sshll.u32 %s520_s13, 4  ;;  %s451_s19 = int_to_ptr.vmem [resolvable:$false] %s450_s19 }
  0x5a   : > { %s452_s23 = scalar_lea.vmem %s451_s19, 256  ;;  %p453_p8 = scmp.lt.s32.totalorder %s698_s14, %s451_s19 }
  0x5b   : > { %v204_v6 = vadd.f32 %v203_v4, %v199_v3  ;;  %p449_p5 = pneg %p448_p7  ;;  %p454_p9 = scmp.lt.s32.totalorder %s452_s23, %s446_s17 }
  0x5d   : > { %v205_v7 = vrot.slane %v204_v6, 2  ;;  %p455_p0 = por %p454_p9, %p453_p8 }
  0x5f   : > { %v206_v9 = vadd.f32 %v205_v7, %v204_v6  ;;  %p456_p1 = pnand %p455_p0, %p449_p5 }
  0x61   : > { %v207_v10 = vrot.slane %v206_v9, 1 }
  0x63   : > { %v208_v11 = vadd.f32 %v207_v10, %v206_v9 }
  0x65   : > { %v211_v12 = vsel %vm202_vm0, %v208_v11, 0.0 }
  0x66   : > { %212 = vst [vmem:[%s195_s29] sm:$0xff] %v211_v12 }
  0x67   : > { %459 = shalt.err (!%p456_p1)
}
  0x68   : > { %s460_s25 = scalar_lea.hbm %s703_s16, 128  ;;  %s464_s5 = scalar_lea.hbm %s747_s2, 256 }
  0x69   : > { %p461_p11 = scmp.ne.s32.totalorder %s703_s16, %s460_s25  ;;  %p465_p4 = scmp.lt.u32.totalorder %s703_s16, %s747_s2 }
  0x6a   : > { %p466_p10 = scmp.lt.u32.totalorder %s464_s5, %s460_s25  ;;  %p468_p6 = scmp.lt.u32.totalorder %s460_s25, %s703_s16 }
  0x6b   : > { %p462_p12 = pnand %p461_p11, %p760_p13 }
  0x6c   : > { %p467_p3 = por %p466_p10, %p465_p4 }
  0x6d   : > { %p463_p2 = pneg %p462_p12 }
  0x6e   : > { %p469_p7 = por %p468_p6, %p467_p3 }
  0x70   : > { %p470_p5 = pnand %p469_p7, %p463_p2 }
  0x72   : > { %473 = shalt.err (!%p470_p5)
}
  0x73   : > { %339 = dma.vmem_to_hbm [thread:$0]  (%p760_p13), %s698_s14, 128, %s703_s16, %s214_s24  }
  0x74 PF: > { %s239_s30 = sand.u32 1, %s504_s9   ;;  %p761_p8 = scmp.ne.s32.totalorder %s753_s22, 0 }
  0x75   : > { %p762_p9 = scmp.ge.s32.totalorder %s516_s12, 2  ;;  %s240_s3 = scalar_lea.sflag [#allocation4], %s239_s30 }
  0x77   : > { %p349_p0 = pnand %p762_p9, %p761_p8 }
  0x79   : > { %499 = dma.done.wait (!%p349_p0), %s240_s3, 128  }
  0x7a   : > { %501 = vsyncadd (!%p349_p0), %s240_s3, 4294967168  ;;  %p18_p1 = scmp.ge.s32.totalorder %s561_s15, 4   ;;  %s763_s9 = smov %s508_s10 }
  0x7b   : > { %s764_s10 = smov %s512_s11  ;;  %s765_s11 = smov %s573_s18 }
  0x7c   : > { %s766_s12 = smov %s561_s15  ;;  %20 = sbr.rel (!%p18_p1) target bundleno = 7 (0x7), region = 86 }
  0x83   :  { %245 = vsyncpa [#allocation3], 1 }
  0x84   :  { %247 = vsyncpa [#allocation3 + $0x1], 1 }
  0x85   :  { %248 = vsyncpa [#allocation6], 1 }
  0x86   :  { %250 = vsyncpa [#allocation6 + $0x1], 1 }
  0x87   :  { %251 = vsyncpa [#allocation4], 1 }
  0x88   :  { %253 = vsyncpa [#allocation4 + $0x1], 1 }

</bundles_post_ra>
